<compile_context>
chip_gen: v7x
topology: tpu7x:2x2x1
jax: 0.10.0
libtpu: 0.0.40
codegen_flags: <defaults>
</compile_context>

<pallas_src>
import functools

import jax
import jax.numpy as jnp
from jax.experimental import pallas as pl
from jax.experimental.pallas import tpu as pltpu


def _round_up(x, n):
    return ((x + n - 1) // n) * n


def _mlp_trunk_kernel(y_ref, w1t_ref, b1_ref, w2t_ref, b2_ref, w3t_ref, b3_ref,
                      o_ref, *, chunk):
    # y_ref:   (d_in, tm)    f32   rows on lanes (lane-dense)
    # w1t_ref: (H, d_in)     f32
    # b1_ref:  (H, 1)        f32
    # w2t_ref: (H, H)        f32
    # b2_ref:  (H, 1)        f32
    # w3t_ref: (d_out, H)    f32
    # b3_ref:  (d_out, 1)    f32
    # o_ref:   (tm, d_out)   f32   natural layout (no wrapper transpose needed)
    d_in, tm = y_ref.shape
    n_chunks = tm // chunk

    # Hoist all weight/bias loads out of the chunk loop.
    w1t = w1t_ref[...]
    b1 = b1_ref[...]
    w2t = w2t_ref[...]
    b2 = b2_ref[...]
    w3t = w3t_ref[...]
    b3 = b3_ref[...]

    @pl.loop(0, n_chunks)
    def _(c):
        off = pl.multiple_of(c * chunk, chunk)
        yc = y_ref[:, pl.ds(off, chunk)]                     # (d_in, chunk)

        # ---- Layer 1: K = d_in is tiny -> VPU broadcasted FMAs (outer products).
        h = w1t[:, 0:1] * yc[0:1, :]                         # (H, chunk)
        for k in range(1, d_in):                             # static, unrolled
            h = h + w1t[:, k:k + 1] * yc[k:k + 1, :]
        h = jnp.tanh(h + b1)                                 # lane-dense f32 EUP tanh

        # ---- Layer 2: f32 MXU, f32 accumulate.
        h = jnp.dot(w2t, h, preferred_element_type=jnp.float32)
        h = jnp.tanh(h + b2)                                 # (H, chunk)

        # ---- Output layer (no activation), then transpose to natural layout.
        out_t = jnp.dot(w3t, h, preferred_element_type=jnp.float32) + b3  # (d_out, chunk)
        o_ref[pl.ds(off, chunk), :] = out_t.T.astype(o_ref.dtype)


def mlp_trunk_forward(y, params, num_branches, v_d_out, *, tile_m=16384):
    """Pallas implementation of MLPTrunkNet.forward.

    y:       (B, *out_shape, v_d_in) float32 coordinates
    params:  dict with w1 (d_in,H), b1 (1,H), w2 (H,H), b2 (1,H),
             w3 (H, p*v_d_out), b3 (1, p*v_d_out)
    returns: (B, *out_shape, num_branches, v_d_out) float32
    """
    lead_shape = y.shape[:-1]
    d_in = y.shape[-1]
    d_out = num_branches * v_d_out
    hidden = params["w1"].shape[1]

    m = 1
    for s in lead_shape:
        m *= s

    assert tile_m % 128 == 0, "tile_m must be a multiple of 128 (lane axis)"

    # ---- Tile selection.
    m128 = _round_up(m, 128)
    n_tiles = pl.cdiv(m128, tile_m)
    # Give v7x's 2 TensorCores both work when the problem is large enough that
    # halving the tile does not hurt single-TC chips (v5e/v6e).
    if n_tiles == 1 and m128 >= 4096:
        n_tiles = 2
    # Balance tiles (minimizes dead padded rows in the last tile).
    tm = _round_up(pl.cdiv(m128, n_tiles), 128)
    grid_m = pl.cdiv(m128, tm)
    m_pad = grid_m * tm

    # In-kernel compute chunk (lanes) so (H, chunk) activations stay in vregs.
    chunk = 512
    while tm % chunk:
        chunk //= 2

    # ---- Wrapper-side layout plumbing (pad BEFORE transpose so XLA fuses the pad).
    y2d = y.reshape(m, d_in).astype(jnp.float32)
    if m_pad != m:
        y2d = jnp.pad(y2d, ((0, m_pad - m), (0, 0)))
    yT = y2d.T                                                   # (d_in, m_pad)

    w1t = params["w1"].T.astype(jnp.float32)                     # (H, d_in)
    b1c = params["b1"].reshape(hidden, 1).astype(jnp.float32)    # (H, 1)
    w2t = params["w2"].T.astype(jnp.float32)                     # (H, H)
    b2c = params["b2"].reshape(hidden, 1).astype(jnp.float32)    # (H, 1)
    w3t = params["w3"].T.astype(jnp.float32)                     # (d_out, H)
    b3c = params["b3"].reshape(d_out, 1).astype(jnp.float32)     # (d_out, 1)

    cost = pl.CostEstimate(
        flops=2 * m_pad * (d_in * hidden + hidden * hidden + hidden * d_out),
        transcendentals=2 * m_pad * hidden,
        bytes_accessed=(m_pad * d_in * 4 + m_pad * d_out * 4
                        + hidden * d_in * 4 + hidden * hidden * 4
                        + d_out * hidden * 4 + (2 * hidden + d_out) * 4),
    )

    out = pl.pallas_call(
        functools.partial(_mlp_trunk_kernel, chunk=chunk),
        out_shape=jax.ShapeDtypeStruct((m_pad, d_out), jnp.float32),
        grid_spec=pltpu.PrefetchScalarGridSpec(
            num_scalar_prefetch=0,
            grid=(grid_m,),
            in_specs=[
                pl.BlockSpec((d_in, tm), lambda i: (0, i)),        # y^T row tile
                pl.BlockSpec((hidden, d_in), lambda i: (0, 0)),    # W1^T  (resident)
                pl.BlockSpec((hidden, 1), lambda i: (0, 0)),       # b1
                pl.BlockSpec((hidden, hidden), lambda i: (0, 0)),  # W2^T
                pl.BlockSpec((hidden, 1), lambda i: (0, 0)),       # b2
                pl.BlockSpec((d_out, hidden), lambda i: (0, 0)),   # W3^T
                pl.BlockSpec((d_out, 1), lambda i: (0, 0)),        # b3
            ],
            out_specs=pl.BlockSpec((tm, d_out), lambda i: (i, 0)),
        ),
        compiler_params=pltpu.CompilerParams(
            dimension_semantics=("parallel",),
            vmem_limit_bytes=48 * 1024 * 1024,
        ),
        cost_estimate=cost,
    )(yT, w1t, b1c, w2t, b2c, w3t, b3c)

    return out[:m].reshape(*lead_shape, num_branches, v_d_out)


def init_params(key, v_d_in, hidden, num_branches, v_d_out):
    d_out = num_branches * v_d_out
    k1, k2, k3 = jax.random.split(key, 3)
    scale1 = 1.0 / jnp.sqrt(jnp.float32(v_d_in))
    scale2 = 1.0 / jnp.sqrt(jnp.float32(hidden))
    return {
        "w1": jax.random.normal(k1, (v_d_in, hidden), jnp.float32) * scale1,
        "b1": jnp.zeros((1, hidden), jnp.float32),
        "w2": jax.random.normal(k2, (hidden, hidden), jnp.float32) * scale2,
        "b2": jnp.zeros((1, hidden), jnp.float32),
        "w3": jax.random.normal(k3, (hidden, d_out), jnp.float32) * scale2,
        "b3": jnp.zeros((1, d_out), jnp.float32),
    }


def reference_forward(y, params, num_branches, v_d_out):
    hp = jax.lax.Precision.HIGHEST
    h = jnp.tanh(jnp.dot(y, params["w1"], precision=hp) + params["b1"][0])
    h = jnp.tanh(jnp.dot(h, params["w2"], precision=hp) + params["b2"][0])
    out = jnp.dot(h, params["w3"], precision=hp) + params["b3"][0]
    return out.reshape(*y.shape[:-1], num_branches, v_d_out)


if __name__ == "__main__":
    # DeepONet-trunk-like configuration.
    v_d_in = 2                  # coordinate dimension
    v_d_out = 3                 # output function dimension
    num_branches = 4            # p branch networks
    hidden = 32                 # MLP hidden width

    key = jax.random.PRNGKey(0)
    k_params, k_y1, k_y2, k_y3 = jax.random.split(key, 4)
    params = init_params(k_params, v_d_in, hidden, num_branches, v_d_out)

    fwd = jax.jit(functools.partial(
        mlp_trunk_forward, num_branches=num_branches, v_d_out=v_d_out))

    ok = True
    # Case 1: M = 2*8*8  = 128   (one lane tile, no padding).
    # Case 2: M = 2*7*9  = 126   (ragged-tail pad path).
    # Case 3: M = 2*48*48 = 4608 (forced 2-tile grid + multi-chunk inner loop).
    for out_shape, k_y in (((8, 8), k_y1), ((7, 9), k_y2), ((48, 48), k_y3)):
        B = 2
        y = jax.random.normal(k_y, (B, *out_shape, v_d_in), jnp.float32)
        out = jax.block_until_ready(fwd(y, params))
        ref = reference_forward(y, params, num_branches, v_d_out)
        assert out.shape == (B, *out_shape, num_branches, v_d_out), out.shape
        # Pure f32 math end-to-end -> tight tolerance.
        if not jnp.allclose(out, ref, atol=1e-4, rtol=1e-4):
            ok = False
            print("mismatch vs reference, max abs diff:",
                  float(jnp.max(jnp.abs(out - ref))))

    if ok:
        print("KERNEL_OK")
</pallas_src>

<mosaic_0001>
module attributes {stable_mosaic.version = 11 : i64} {
  func.func @_mlp_trunk_kernel(%arg0: i32, %arg1: memref<2x128xf32, #tpu.memory_space<vmem>>, %arg2: memref<32x2xf32, #tpu.memory_space<vmem>>, %arg3: memref<32x1xf32, #tpu.memory_space<vmem>>, %arg4: memref<32x32xf32, #tpu.memory_space<vmem>>, %arg5: memref<32x1xf32, #tpu.memory_space<vmem>>, %arg6: memref<12x32xf32, #tpu.memory_space<vmem>>, %arg7: memref<12x1xf32, #tpu.memory_space<vmem>>, %arg8: memref<128x12xf32, #tpu.memory_space<vmem>>) attributes {dimension_semantics = [#tpu.dimension_semantics<parallel>], iteration_bounds = array<i64: 1>, scalar_prefetch = 0 : i64, scratch_operands = 0 : i64, tpu.core_type = #tpu.core_type<tc>, window_params = [{transform_indices = @transform_0, window_bounds = array<i64: 2, 128>}, {pipeline_mode = #tpu.pipeline_mode<synchronous>, transform_indices = @transform_1, window_bounds = array<i64: 32, 2>}, {pipeline_mode = #tpu.pipeline_mode<synchronous>, transform_indices = @transform_2, window_bounds = array<i64: 32, 1>}, {pipeline_mode = #tpu.pipeline_mode<synchronous>, transform_indices = @transform_3, window_bounds = array<i64: 32, 32>}, {pipeline_mode = #tpu.pipeline_mode<synchronous>, transform_indices = @transform_4, window_bounds = array<i64: 32, 1>}, {pipeline_mode = #tpu.pipeline_mode<synchronous>, transform_indices = @transform_5, window_bounds = array<i64: 12, 32>}, {pipeline_mode = #tpu.pipeline_mode<synchronous>, transform_indices = @transform_6, window_bounds = array<i64: 12, 1>}, {transform_indices = @transform_7, window_bounds = array<i64: 128, 12>}]} {
    %c0 = arith.constant 0 : index
    %c0_0 = arith.constant 0 : index
    %0 = vector.load %arg2[%c0, %c0_0] : memref<32x2xf32, #tpu.memory_space<vmem>>, vector<32x2xf32>
    %c0_1 = arith.constant 0 : index
    %c0_2 = arith.constant 0 : index
    %1 = vector.load %arg3[%c0_1, %c0_2] : memref<32x1xf32, #tpu.memory_space<vmem>>, vector<32x1xf32>
    %c0_3 = arith.constant 0 : index
    %c0_4 = arith.constant 0 : index
    %2 = vector.load %arg4[%c0_3, %c0_4] : memref<32x32xf32, #tpu.memory_space<vmem>>, vector<32x32xf32>
    %c0_5 = arith.constant 0 : index
    %c0_6 = arith.constant 0 : index
    %3 = vector.load %arg5[%c0_5, %c0_6] : memref<32x1xf32, #tpu.memory_space<vmem>>, vector<32x1xf32>
    %c0_7 = arith.constant 0 : index
    %c0_8 = arith.constant 0 : index
    %4 = vector.load %arg6[%c0_7, %c0_8] : memref<12x32xf32, #tpu.memory_space<vmem>>, vector<12x32xf32>
    %c0_9 = arith.constant 0 : index
    %c0_10 = arith.constant 0 : index
    %5 = vector.load %arg7[%c0_9, %c0_10] : memref<12x1xf32, #tpu.memory_space<vmem>>, vector<12x1xf32>
    %c0_i32 = arith.constant 0 : i32
    %c1_i32 = arith.constant 1 : i32
    %6 = arith.muli %c0_i32, %c1_i32 : i32
    %c0_i32_11 = arith.constant 0 : i32
    %7 = arith.addi %c0_i32_11, %6 : i32
    %c128_i32 = arith.constant 128 : i32
    %8 = arith.muli %7, %c128_i32 : i32
    %9 = tpu.assume_multiple %8, 128 : i32
    %c0_12 = arith.constant 0 : index
    %10 = arith.index_cast %9 : i32 to index
    %11 = vector.load %arg1[%c0_12, %10] : memref<2x128xf32, #tpu.memory_space<vmem>>, vector<2x128xf32>
    %12 = vector.extract_strided_slice %0 {offsets = [0, 0], sizes = [32, 1], strides = [1, 1]} : vector<32x2xf32> to vector<32x1xf32>
    %13 = vector.extract_strided_slice %11 {offsets = [0, 0], sizes = [1, 128], strides = [1, 1]} : vector<2x128xf32> to vector<1x128xf32>
    %14 = vector.broadcast %12 : vector<32x1xf32> to vector<32x128xf32>
    %15 = vector.broadcast %13 : vector<1x128xf32> to vector<32x128xf32>
    %16 = arith.mulf %14, %15 : vector<32x128xf32>
    %17 = vector.extract_strided_slice %0 {offsets = [0, 1], sizes = [32, 1], strides = [1, 1]} : vector<32x2xf32> to vector<32x1xf32>
    %18 = vector.extract_strided_slice %11 {offsets = [1, 0], sizes = [1, 128], strides = [1, 1]} : vector<2x128xf32> to vector<1x128xf32>
    %19 = vector.broadcast %17 : vector<32x1xf32> to vector<32x128xf32>
    %20 = vector.broadcast %18 : vector<1x128xf32> to vector<32x128xf32>
    %21 = arith.mulf %19, %20 : vector<32x128xf32>
    %22 = arith.addf %16, %21 : vector<32x128xf32>
    %23 = vector.broadcast %1 : vector<32x1xf32> to vector<32x128xf32>
    %24 = arith.addf %22, %23 : vector<32x128xf32>
    %25 = math.tanh %24 : vector<32x128xf32>
    %cst = arith.constant dense<0.000000e+00> : vector<32x128xf32>
    %26 = tpu.matmul %2, %25, %cst {dimension_numbers = #tpu.dot_dimension_numbers<[1], [0], [0], [1], [0, 0, 1, 1], [], []>} : vector<32x32xf32>, vector<32x128xf32>, vector<32x128xf32> -> vector<32x128xf32>
    %27 = vector.broadcast %3 : vector<32x1xf32> to vector<32x128xf32>
    %28 = arith.addf %26, %27 : vector<32x128xf32>
    %29 = math.tanh %28 : vector<32x128xf32>
    %cst_13 = arith.constant dense<0.000000e+00> : vector<12x128xf32>
    %30 = tpu.matmul %4, %29, %cst_13 {dimension_numbers = #tpu.dot_dimension_numbers<[1], [0], [0], [1], [0, 0, 1, 1], [], []>} : vector<12x32xf32>, vector<32x128xf32>, vector<12x128xf32> -> vector<12x128xf32>
    %31 = vector.broadcast %5 : vector<12x1xf32> to vector<12x128xf32>
    %32 = arith.addf %30, %31 : vector<12x128xf32>
    %33 = tpu.transpose %32, [1, 0] : vector<12x128xf32> -> vector<128x12xf32>
    %34 = arith.index_cast %9 : i32 to index
    %c0_14 = arith.constant 0 : index
    %35 = vector.load %arg8[%34, %c0_14] : memref<128x12xf32, #tpu.memory_space<vmem>>, vector<128x12xf32>
    tpu.vector_store %arg8[%34, %c0_14], %33 {strides = array<i32>} : memref<128x12xf32, #tpu.memory_space<vmem>>, vector<128x12xf32>,
    %c1_i32_15 = arith.constant 1 : i32
    return
  }
  func.func @transform_0(%arg0: i32) -> (i32, i32) {
    %c0_i32 = arith.constant 0 : i32
    %c0_i32_0 = arith.constant 0 : i32
    return %c0_i32, %arg0 : i32, i32
  }
  func.func @transform_1(%arg0: i32) -> (i32, i32) {
    %c0_i32 = arith.constant 0 : i32
    %c0_i32_0 = arith.constant 0 : i32
    %c0_i32_1 = arith.constant 0 : i32
    return %c0_i32, %c0_i32_0 : i32, i32
  }
  func.func @transform_2(%arg0: i32) -> (i32, i32) {
    %c0_i32 = arith.constant 0 : i32
    %c0_i32_0 = arith.constant 0 : i32
    %c0_i32_1 = arith.constant 0 : i32
    return %c0_i32, %c0_i32_0 : i32, i32
  }
  func.func @transform_3(%arg0: i32) -> (i32, i32) {
    %c0_i32 = arith.constant 0 : i32
    %c0_i32_0 = arith.constant 0 : i32
    %c0_i32_1 = arith.constant 0 : i32
    return %c0_i32, %c0_i32_0 : i32, i32
  }
  func.func @transform_4(%arg0: i32) -> (i32, i32) {
    %c0_i32 = arith.constant 0 : i32
    %c0_i32_0 = arith.constant 0 : i32
    %c0_i32_1 = arith.constant 0 : i32
    return %c0_i32, %c0_i32_0 : i32, i32
  }
  func.func @transform_5(%arg0: i32) -> (i32, i32) {
    %c0_i32 = arith.constant 0 : i32
    %c0_i32_0 = arith.constant 0 : i32
    %c0_i32_1 = arith.constant 0 : i32
    return %c0_i32, %c0_i32_0 : i32, i32
  }
  func.func @transform_6(%arg0: i32) -> (i32, i32) {
    %c0_i32 = arith.constant 0 : i32
    %c0_i32_0 = arith.constant 0 : i32
    %c0_i32_1 = arith.constant 0 : i32
    return %c0_i32, %c0_i32_0 : i32, i32
  }
  func.func @transform_7(%arg0: i32) -> (i32, i32) {
    %c0_i32 = arith.constant 0 : i32
    %c0_i32_0 = arith.constant 0 : i32
    return %arg0, %c0_i32 : i32, i32
  }
}

</mosaic_0001>

<bundles_post_ra>
// kernel: mlp_trunk_forward.1
= control target key start
LH: loop header
LB: loop body
LE: loop exit
PB: predicated region body
PF: predicated region fallthrough
CT: control target
= control target key end

     0   :  { %v483_v0 = vmov 1   ;;  %v484_v4 = vmov 0   ;;  %vm151_vm0 = vcmask 261120   ;;  %v67_v17 = vlaneseq  ;;  %s658_s1 = inlined_call_operand.vmem [shape: f32[32,2], index: 1, kind: input, shape index: {}]   ;;  %s659_s2 = inlined_call_operand.vmem [shape: f32[32,1], index: 2, kind: input, shape index: {}]   ;;  %s660_s4 = inlined_call_operand.vmem [shape: f32[32,1], index: 4, kind: input, shape index: {}]   ;;  %s661_s6 = inlined_call_operand.vmem [shape: f32[12,1], index: 6, kind: input, shape index: {}]   ;;  %s662_s3 = inlined_call_operand.vmem [shape: f32[32,32], index: 3, kind: input, shape index: {}]   ;;  %s663_s0 = inlined_call_operand.vmem [shape: f32[2,128], index: 0, kind: input, shape index: {}]   ;;  %s664_s5 = inlined_call_operand.vmem [shape: f32[12,32], index: 5, kind: input, shape index: {}]   ;;  %s665_s7 = inlined_call_operand.vmem [shape: f32[128,12], index: 7, kind: output, shape index: {}]  }
   0x1   :  { %463 = vset.pattern.permute.xlu0 %v483_v0  ;;  %461 = vset.pattern.permute.xlu1 %v483_v0  ;;  %v28_v1 = vld [vmem:[%s658_s1 + $0x10] sm:$0xff]  ;;  %v26_v2 = vld [vmem:[%s658_s1] sm:$0xff]  ;;  %v27_v3 = vld [vmem:[%s658_s1 + $0x8] sm:$0xff]  ;;  %vm376_vm1 = vcmask 97280  }
   0x2   :  { %84 = vperm.xlu0 %463, %v28_v1   ;;  %76 = vperm.xlu1 %461, %v26_v2   ;;  %v29_v5 = vld [vmem:[%s658_s1 + $0x18] sm:$0xff]  ;;  %v31_v6 = vld [vmem:[%s659_s2 + $0x8] sm:$0xff]  ;;  %v30_v7 = vld [vmem:[%s659_s2] sm:$0xff]  ;;  %v68_v20 = vshrl.u32 %v67_v17, 7 }
   0x3   :  { %v38_v8 = vld [vmem:[%s660_s4] sm:$0xff]  ;;  %v32_v9 = vld [vmem:[%s659_s2 + $0x10] sm:$0xff]  ;;  %v33_v11 = vld [vmem:[%s659_s2 + $0x18] sm:$0xff] }
   0x4   :  { %v40_v10 = vld [vmem:[%s660_s4 + $0x10] sm:$0xff]  ;;  %v44_v12 = vld [vmem:[%s661_s6] sm:$0xff]  ;;  %v39_v13 = vld [vmem:[%s660_s4 + $0x8] sm:$0xff]  ;;  %v69_v23 = vsub.s32 0, %v68_v20  ;;  %v93_v24 = vsub.s32 1, %v68_v20 }
   0x5   :  { %v41_v14 = vld [vmem:[%s660_s4 + $0x18] sm:$0xff]  ;;  %v45_v15 = vld [vmem:[%s661_s6 + $0x8] sm:$0xf]  ;;  %v34_v16 = vld [vmem:[%s662_s3] sm:$0xff] }
   0x6   :  { %464 = vset.pattern.permute.xlu0 %v484_v4  ;;  %80 = vperm.xlu1 %461, %v27_v3   ;;  %v46_v25 = vld [vmem:[%s663_s0] sm:$0x3]  ;;  %v35_v58 = vld [vmem:[%s662_s3 + $0x8] sm:$0xff]  ;;  %v36_v59 = vld [vmem:[%s662_s3 + $0x10] sm:$0xff] }
   0x7   :  { %49 = vperm.xlu0 %464, %v26_v2   ;;  %425 = vmatprep.mubr.msk.f32.mxu0 %vm151_vm0, %v34_v16  ;;  %v70_v28 = vrot.slane %v46_v25, %v69_v23  ;;  %v94_v29 = vrot.slane %v46_v25, %v93_v24  ;;  %v37_v60 = vld [vmem:[%s662_s3 + $0x18] sm:$0xff]  ;;  %v42_v61 = vld [vmem:[%s664_s5] sm:$0xff]  ;;  %v43_v16 = vld [vmem:[%s664_s5 + $0x8] sm:$0xf] }
   0x8   :  { %439 = vmatprep.mubr.msk.f32.mxu1 %vm151_vm0, %v42_v61 }
   0xa   :  { %462 = vset.pattern.permute.xlu1 %v484_v4 }
   0xb   :  { %54 = vperm.xlu0 %464, %v27_v3   ;;  %64 = vperm.xlu1 %462, %v29_v5  }
   0xf   :  { %59 = vperm.xlu0 %464, %v28_v1   ;;  %465 = vset.pattern.permute.xlu1 %v483_v0 }
  0x10   :  { %88 = vperm.xlu1 %465, %v29_v5  }
  0x13   :  { %110 = vperm.xlu0 %464, %v31_v6  }
  0x14   :  { %466 = vset.pattern.permute.xlu1 %v484_v4 }
  0x15   :  { %105 = vperm.xlu1 %466, %v30_v7  }
  0x17   :  { %133 = vperm.xlu0 %464, %v38_v8  }
  0x19   :  { %115 = vperm.xlu1 %466, %v32_v9  }
  0x1b   :  { %143 = vperm.xlu0 %464, %v40_v10  }
  0x1d   :  { %120 = vperm.xlu1 %466, %v33_v11  }
  0x1f   :  { %255 = vperm.xlu0 %464, %v44_v12  }
  0x21   :  { %138 = vperm.xlu1 %466, %v39_v13  }
  0x25   :  { %148 = vperm.xlu1 %466, %v41_v14  }
  0x29   :  { %260 = vperm.xlu1 %466, %v45_v15  }
  0x81   :  { %v77_v18 = vpop.permute.xlu1 %76  ;;  %v85_v19 = vpop.permute.xlu0 %84 }
  0x82   :  { %v95_v35 = vmul.f32 %v94_v29, %v77_v18  ;;  %v97_v43 = vmul.f32 %v94_v29, %v85_v19 }
  0x85   :  { %v81_v21 = vpop.permute.xlu1 %80 }
  0x86   :  { %v50_v22 = vpop.permute.xlu0 %49  ;;  %v96_v32 = vmul.f32 %v94_v29, %v81_v21 }
  0x87   :  { %v71_v33 = vmul.f32 %v70_v28, %v50_v22 }
  0x89   :  { %v99_v39 = vadd.f32 %v95_v35, %v71_v33 }
  0x8a   :  { %v55_v26 = vpop.permute.xlu0 %54  ;;  %v65_v27 = vpop.permute.xlu1 %64 }
  0x8b   :  { %v72_v30 = vmul.f32 %v70_v28, %v55_v26  ;;  %v74_v47 = vmul.f32 %v70_v28, %v65_v27 }
  0x8d   :  { %v100_v36 = vadd.f32 %v96_v32, %v72_v30 }
  0x8e   :  { %v60_v31 = vpop.permute.xlu0 %59 }
  0x8f   :  { %v89_v34 = vpop.permute.xlu1 %88  ;;  %v73_v40 = vmul.f32 %v70_v28, %v60_v31 }
  0x90   :  { %v98_v44 = vmul.f32 %v94_v29, %v89_v34 }
  0x91   :  { %v101_v46 = vadd.f32 %v97_v43, %v73_v40 }
  0x92   :  { %v111_v37 = vpop.permute.xlu0 %110  ;;  %v102_v49 = vadd.f32 %v98_v44, %v74_v47 }
  0x93   :  { %v124_v38 = vadd.f32 %v111_v37, %v100_v36 }
  0x94   :  { %v106_v41 = vpop.permute.xlu1 %105 }
  0x95   :  { %v123_v42 = vadd.f32 %v106_v41, %v99_v39  ;;  %467 = vtanh.f32 %v124_v38 }
  0x96   :  { %v134_v63 = vpop.permute.xlu0 %133 }
  0x97   :  { %469 = vtanh.f32 %v123_v42 }
  0x98   :  { %v116_v45 = vpop.permute.xlu1 %115 }
  0x99   :  { %v125_v48 = vadd.f32 %v116_v45, %v101_v46 }
  0x9a   :  { %v144_v6 = vpop.permute.xlu0 %143 }
  0x9b   :  { %471 = vtanh.f32 %v125_v48 }
  0x9c   :  { %v121_v50 = vpop.permute.xlu1 %120 }
  0x9d   :  { %v126_v51 = vadd.f32 %v121_v50, %v102_v49 }
  0x9e   :  { %v256_v18 = vpop.permute.xlu0 %255 }
  0x9f   :  { %473 = vtanh.f32 %v126_v51  ;;  %v468_v52 = vpop.eup %467 }
  0xa0   :  { %v139_v62 = vpop.permute.xlu1 %138 }
  0xa1   :  { %v470_v53 = vpop.eup %469 }
  0xa2   :  { %v442_v54 = vpack.c.bf16 %v468_v52, %v470_v53 }
  0xa4   :  { %443 = vmatprep.subr.bf16.mxu0 %v442_v54  ;;  %v149_v4 = vpop.permute.xlu1 %148 }
  0xa5   :  { %445 = vmatpush3.bf16.msra.mxu0 %v442_v54  ;;  %v472_v55 = vpop.eup %471 }
  0xa8   :  { %v261_v21 = vpop.permute.xlu1 %260 }
  0xa9   :  { %v474_v56 = vpop.eup %473 }
  0xaa   :  { %v446_v57 = vpack.c.bf16 %v474_v56, %v472_v55 }
  0xac   :  { %447 = vmatprep.subr.bf16.mxu0 %v446_v57 }
  0xad   :  { %449 = vmatpush3.bf16.msra.mxu0 %v446_v57 }
  0xb0   :  { %426 = vmatmul.mubr.msk.f32.vlgmr.msra.gmra.mrb[0].mxu0 %vm151_vm0, %v35_v58 }
  0xb1   :  { %428 = vmatprep.mubr.msk.f32.mxu0 %vm151_vm0, %v36_v59 }
  0xb4   :  { %429 = vmatmul.mubr.msk.f32.gmra.mrb[2].mxu0 %vm151_vm0, %v37_v60 }
 0x183   :  { %v427_v0 = vpop.f32.mrb[0].mxu0 }
 0x184   :  { %v236_v1 = vadd.f32 %v427_v0, %v139_v62  ;;  %v230_v2 = vpop.f32.mrb[1].mxu0 }
 0x185   :  { %v231_v3 = vadd.f32 %v230_v2, %v134_v63 }
 0x186   :  { %475 = vtanh.f32 %v236_v1 }
 0x187   :  { %477 = vtanh.f32 %v231_v3  ;;  %v430_v5 = vpop.f32.mrb[2].mxu0 }
 0x188   :  { %v246_v7 = vadd.f32 %v430_v5, %v149_v4  ;;  %v240_v8 = vpop.f32.mrb[3].mxu0 }
 0x189   :  { %v241_v9 = vadd.f32 %v240_v8, %v144_v6 }
 0x18a   :  { %479 = vtanh.f32 %v246_v7 }
 0x18b   :  { %481 = vtanh.f32 %v241_v9 }
 0x190   :  { %v476_v10 = vpop.eup %475 }
 0x191   :  { %v478_v11 = vpop.eup %477 }
 0x192   :  { %v450_v12 = vpack.c.bf16 %v476_v10, %v478_v11 }
 0x194   :  { %v480_v13 = vpop.eup %479  ;;  %451 = vmatprep.subr.bf16.mxu1 %v450_v12 }
 0x195   :  { %v482_v14 = vpop.eup %481  ;;  %453 = vmatpush3.bf16.msra.mxu1 %v450_v12 }
 0x196   :  { %v454_v15 = vpack.c.bf16 %v480_v13, %v482_v14 }
 0x198   :  { %455 = vmatprep.subr.bf16.mxu1 %v454_v15 }
 0x199   :  { %457 = vmatpush3.bf16.msra.mxu1 %v454_v15 }
 0x19c   :  { %440 = vmatmul.mubr.msk.f32.vlgmr.msra.gmra.mrb[0].mxu1 %vm151_vm0, %v43_v16 }
 0x26f   :  { %v441_v17 = vpop.f32.mrb[0].mxu1 }
 0x270   :  { %v335_v19 = vpop.f32.mrb[1].mxu1  ;;  %v341_v22 = vadd.f32 %v441_v17, %v261_v21 }
 0x271   :  { %v336_v20 = vadd.f32 %v335_v19, %v256_v18 }
 0x273   :  { %344 = vxpose.xlu0.b32.start [1/2] (short) %v336_v20, 128 }
 0x277   :  { %345 = vxpose.xlu0.b32.end [2/2] (short) %v341_v22, 128 }
 0x2f3   :  { %v360_v23 = vpop.trf.xlu0 }
 0x2f4   :  { %377 = vst.msk [vmem:[%s665_s7] sm:$0xff] %vm376_vm1, %v360_v23 }
 0x2f7   :  { %v361_v24 = vpop.trf.xlu0 }
 0x2f8   :  { %378 = vst.msk [vmem:[%s665_s7 + $0x8] sm:$0xff] %vm376_vm1, %v361_v24 }
 0x2fb   :  { %v362_v25 = vpop.trf.xlu0 }
 0x2fc   :  { %379 = vst.msk [vmem:[%s665_s7 + $0x10] sm:$0xff] %vm376_vm1, %v362_v25 }
 0x2ff   :  { %v363_v26 = vpop.trf.xlu0 }
 0x300   :  { %380 = vst.msk [vmem:[%s665_s7 + $0x18] sm:$0xff] %vm376_vm1, %v363_v26 }
 0x303   :  { %v364_v27 = vpop.trf.xlu0 }
 0x304   :  { %381 = vst.msk [vmem:[%s665_s7 + $0x20] sm:$0xff] %vm376_vm1, %v364_v27 }
 0x307   :  { %v365_v28 = vpop.trf.xlu0 }
 0x308   :  { %382 = vst.msk [vmem:[%s665_s7 + $0x28] sm:$0xff] %vm376_vm1, %v365_v28 }
 0x30b   :  { %v366_v29 = vpop.trf.xlu0 }
 0x30c   :  { %383 = vst.msk [vmem:[%s665_s7 + $0x30] sm:$0xff] %vm376_vm1, %v366_v29 }
 0x30f   :  { %v367_v30 = vpop.trf.xlu0 }
 0x310   :  { %384 = vst.msk [vmem:[%s665_s7 + $0x38] sm:$0xff] %vm376_vm1, %v367_v30 }
 0x313   :  { %v368_v31 = vpop.trf.xlu0 }
 0x314   :  { %385 = vst.msk [vmem:[%s665_s7 + $0x40] sm:$0xff] %vm376_vm1, %v368_v31 }
 0x317   :  { %v369_v32 = vpop.trf.xlu0 }
 0x318   :  { %386 = vst.msk [vmem:[%s665_s7 + $0x48] sm:$0xff] %vm376_vm1, %v369_v32 }
 0x31b   :  { %v370_v33 = vpop.trf.xlu0 }
 0x31c   :  { %387 = vst.msk [vmem:[%s665_s7 + $0x50] sm:$0xff] %vm376_vm1, %v370_v33 }
 0x31f   :  { %v371_v34 = vpop.trf.xlu0 }
 0x320   :  { %388 = vst.msk [vmem:[%s665_s7 + $0x58] sm:$0xff] %vm376_vm1, %v371_v34 }
 0x323   :  { %v372_v35 = vpop.trf.xlu0 }
 0x324   :  { %389 = vst.msk [vmem:[%s665_s7 + $0x60] sm:$0xff] %vm376_vm1, %v372_v35 }
 0x327   :  { %v373_v36 = vpop.trf.xlu0 }
 0x328   :  { %390 = vst.msk [vmem:[%s665_s7 + $0x68] sm:$0xff] %vm376_vm1, %v373_v36 }
 0x32b   :  { %v374_v37 = vpop.trf.xlu0 }
 0x32c   :  { %391 = vst.msk [vmem:[%s665_s7 + $0x70] sm:$0xff] %vm376_vm1, %v374_v37 }
 0x32f   :  { %v375_v38 = vpop.trf.xlu0 }
 0x330   :  { %392 = vst.msk [vmem:[%s665_s7 + $0x78] sm:$0xff] %vm376_vm1, %v375_v38 }

</bundles_post_ra>
